<compile_context>
chip_gen: v7x
topology: tpu7x:2x2x1
jax: 0.10.0
libtpu: 0.0.40
codegen_flags: <defaults>
</compile_context>

<pallas_src>
import jax
import jax.numpy as jnp
from jax.experimental import pallas as pl
from jax.experimental.pallas import tpu as pltpu


def mlp_kernel(x_ref, w1_ref, b1_ref, w2_ref, b2_ref, o_ref):
    # Hidden layer: bf16 operands on the MXU, f32 accumulate, bias + ReLU in f32.
    x = x_ref[...].astype(jnp.bfloat16)
    h = jnp.dot(x, w1_ref[...], preferred_element_type=jnp.float32)
    h = jnp.maximum(h + b1_ref[...], 0.0)
    # Output layer: keep h and w2 in f32 (no requantization), f32 accumulate.
    y = jnp.dot(h, w2_ref[...], preferred_element_type=jnp.float32)
    o_ref[...] = (y + b2_ref[...]).astype(o_ref.dtype)


def _round_up(x, m):
    return (x + m - 1) // m * m


def _choose_tile_b(B, max_tile_b=512):
    """Batch tile: minimal padding for tiny B, >=2 grid steps for B>128 (v7x),
    and at most 1/8 of processed rows wasted on the partial last block."""
    if B <= 128:
        return max(8, _round_up(B, 8))
    for cand in (512, 384, 256):
        cand = min(cand, max_tile_b)
        steps = pl.cdiv(B, cand)
        waste = steps * cand - B
        if steps >= 2 and waste * 8 <= steps * cand:
            return cand
    return 128


def prepare_params(w1, b1, w2, b2):
    """One-time parameter prep (hoisted out of the per-call path).
    w1:(in,128) -> bf16 (MXU operand); w2:(128,out), biases stay f32."""
    return (w1.astype(jnp.bfloat16),
            b1.astype(jnp.float32).reshape(1, -1),
            w2.astype(jnp.float32),
            b2.astype(jnp.float32).reshape(1, -1))


def linear_regression_forward(x, params, *, max_tile_b=512):
    """x:(B,in) f32, params = prepare_params(...) -> (B,out) f32."""
    w1p, b1p, w2p, b2p = params
    B, in_dim = x.shape
    hid = w1p.shape[1]
    out_dim = w2p.shape[1]

    tile_b = _choose_tile_b(B, max_tile_b)
    steps = pl.cdiv(B, tile_b)

    flops = 2 * steps * tile_b * (in_dim * hid + hid * out_dim)
    bytes_accessed = (x.size * 4 + w1p.size * 2 + w2p.size * 4
                      + b1p.size * 4 + b2p.size * 4 + B * out_dim * 4)

    return pl.pallas_call(
        mlp_kernel,
        out_shape=jax.ShapeDtypeStruct((B, out_dim), jnp.float32),
        grid=(steps,),
        in_specs=[
            pl.BlockSpec((tile_b, in_dim), lambda i: (i, 0)),  # x: tiled over batch
            pl.BlockSpec((in_dim, hid), lambda i: (0, 0)),     # w1: resident (bf16)
            pl.BlockSpec((1, hid), lambda i: (0, 0)),          # b1: resident (f32)
            pl.BlockSpec((hid, out_dim), lambda i: (0, 0)),    # w2: resident (f32)
            pl.BlockSpec((1, out_dim), lambda i: (0, 0)),      # b2: resident (f32)
        ],
        out_specs=pl.BlockSpec((tile_b, out_dim), lambda i: (i, 0)),
        compiler_params=pltpu.CompilerParams(
            dimension_semantics=("parallel",),
            vmem_limit_bytes=32 * 1024 * 1024,
        ),
        cost_estimate=pl.CostEstimate(
            flops=flops, transcendentals=0, bytes_accessed=bytes_accessed),
    )(x, w1p, b1p, w2p, b2p)


def init_params(key, input_dim, hidden_dim, output_dim):
    # Deterministic init mirroring nn.Linear's uniform(-1/sqrt(fan_in), 1/sqrt(fan_in)).
    k1, k2, k3, k4 = jax.random.split(key, 4)
    bound1 = 1.0 / jnp.sqrt(input_dim)
    bound2 = 1.0 / jnp.sqrt(hidden_dim)
    w1 = jax.random.uniform(k1, (input_dim, hidden_dim), jnp.float32, -bound1, bound1)
    b1 = jax.random.uniform(k2, (hidden_dim,), jnp.float32, -bound1, bound1)
    w2 = jax.random.uniform(k3, (hidden_dim, output_dim), jnp.float32, -bound2, bound2)
    b2 = jax.random.uniform(k4, (output_dim,), jnp.float32, -bound2, bound2)
    return w1, b1, w2, b2


def _reference(x, w1, b1, w2, b2):
    # Matches kernel precision: bf16 operands / f32 accumulate for layer 1,
    # full f32 for layer 2.
    h = jnp.dot(x.astype(jnp.bfloat16), w1.astype(jnp.bfloat16),
                preferred_element_type=jnp.float32) + b1
    h = jnp.maximum(h, 0.0)
    return jnp.dot(h, w2.astype(jnp.float32),
                   preferred_element_type=jnp.float32) + b2


if __name__ == "__main__":
    input_dim, hidden_dim, output_dim = 32, 128, 16
    batch = 8

    key = jax.random.PRNGKey(0)
    kx, kp = jax.random.split(key)
    x = jax.random.normal(kx, (batch, input_dim), jnp.float32)
    w1, b1, w2, b2 = init_params(kp, input_dim, hidden_dim, output_dim)

    params = prepare_params(w1, b1, w2, b2)      # hoisted, done once
    fwd = jax.jit(linear_regression_forward)

    out = jax.block_until_ready(fwd(x, params))
    assert out.shape == (batch, output_dim)

    # Check against a precision-matched reference.
    ref = _reference(x, w1, b1, w2, b2)
    assert jnp.allclose(out, ref, atol=1e-3, rtol=1e-3)
    # Semantic check against full-f32 math (loose tolerance due to bf16 layer-1 operands).
    ref_f32 = jnp.maximum(x @ w1 + b1, 0.0) @ w2 + b2
    assert jnp.allclose(out, ref_f32, atol=5e-2, rtol=5e-2)

    # Exercise a multi-tile grid with a partial last block (B=300 -> tile_b=128, grid=(3,)).
    batch2 = 300
    x2 = jax.random.normal(jax.random.PRNGKey(1), (batch2, input_dim), jnp.float32)
    out2 = jax.block_until_ready(fwd(x2, params))
    ref2 = _reference(x2, w1, b1, w2, b2)
    assert out2.shape == (batch2, output_dim)
    assert jnp.allclose(out2, ref2, atol=1e-3, rtol=1e-3)

    print("KERNEL_OK")
</pallas_src>

<mosaic_0001>
module attributes {stable_mosaic.version = 11 : i64} {
  func.func @mlp_kernel(%arg0: i32, %arg1: memref<8x32xf32, #tpu.memory_space<vmem>>, %arg2: memref<32x128xbf16, #tpu.memory_space<vmem>>, %arg3: memref<1x128xf32, #tpu.memory_space<vmem>>, %arg4: memref<128x16xf32, #tpu.memory_space<vmem>>, %arg5: memref<1x16xf32, #tpu.memory_space<vmem>>, %arg6: memref<8x16xf32, #tpu.memory_space<vmem>>) attributes {dimension_semantics = [#tpu.dimension_semantics<parallel>], iteration_bounds = array<i64: 1>, scalar_prefetch = 0 : i64, scratch_operands = 0 : i64, tpu.core_type = #tpu.core_type<tc>, window_params = [{transform_indices = @transform_0, window_bounds = array<i64: 8, 32>}, {pipeline_mode = #tpu.pipeline_mode<synchronous>, transform_indices = @transform_1, window_bounds = array<i64: 32, 128>}, {pipeline_mode = #tpu.pipeline_mode<synchronous>, transform_indices = @transform_2, window_bounds = array<i64: 1, 128>}, {pipeline_mode = #tpu.pipeline_mode<synchronous>, transform_indices = @transform_3, window_bounds = array<i64: 128, 16>}, {pipeline_mode = #tpu.pipeline_mode<synchronous>, transform_indices = @transform_4, window_bounds = array<i64: 1, 16>}, {transform_indices = @transform_5, window_bounds = array<i64: 8, 16>}]} {
    %c0 = arith.constant 0 : index
    %c0_0 = arith.constant 0 : index
    %0 = vector.load %arg1[%c0, %c0_0] : memref<8x32xf32, #tpu.memory_space<vmem>>, vector<8x32xf32>
    %1 = arith.truncf %0 : vector<8x32xf32> to vector<8x32xbf16>
    %c0_1 = arith.constant 0 : index
    %c0_2 = arith.constant 0 : index
    %2 = vector.load %arg2[%c0_1, %c0_2] : memref<32x128xbf16, #tpu.memory_space<vmem>>, vector<32x128xbf16>
    %cst = arith.constant dense<0.000000e+00> : vector<8x128xf32>
    %3 = tpu.matmul %1, %2, %cst {dimension_numbers = #tpu.dot_dimension_numbers<[1], [0], [0], [1], [0, 0, 1, 1], [], []>} : vector<8x32xbf16>, vector<32x128xbf16>, vector<8x128xf32> -> vector<8x128xf32>
    %c0_3 = arith.constant 0 : index
    %c0_4 = arith.constant 0 : index
    %4 = vector.load %arg3[%c0_3, %c0_4] : memref<1x128xf32, #tpu.memory_space<vmem>>, vector<1x128xf32>
    %5 = vector.broadcast %4 : vector<1x128xf32> to vector<8x128xf32>
    %6 = arith.addf %3, %5 : vector<8x128xf32>
    %cst_5 = arith.constant 0.000000e+00 : f32
    %7 = vector.broadcast %cst_5 : f32 to vector<8x128xf32>
    %8 = arith.maximumf %6, %7 : vector<8x128xf32>
    %c0_6 = arith.constant 0 : index
    %c0_7 = arith.constant 0 : index
    %9 = vector.load %arg4[%c0_6, %c0_7] : memref<128x16xf32, #tpu.memory_space<vmem>>, vector<128x16xf32>
    %cst_8 = arith.constant dense<0.000000e+00> : vector<8x16xf32>
    %10 = tpu.matmul %8, %9, %cst_8 {dimension_numbers = #tpu.dot_dimension_numbers<[1], [0], [0], [1], [0, 0, 1, 1], [], []>} : vector<8x128xf32>, vector<128x16xf32>, vector<8x16xf32> -> vector<8x16xf32>
    %c0_9 = arith.constant 0 : index
    %c0_10 = arith.constant 0 : index
    %11 = vector.load %arg5[%c0_9, %c0_10] : memref<1x16xf32, #tpu.memory_space<vmem>>, vector<1x16xf32>
    %12 = vector.broadcast %11 : vector<1x16xf32> to vector<8x16xf32>
    %13 = arith.addf %10, %12 : vector<8x16xf32>
    %c0_11 = arith.constant 0 : index
    %c0_12 = arith.constant 0 : index
    %14 = vector.load %arg6[%c0_11, %c0_12] : memref<8x16xf32, #tpu.memory_space<vmem>>, vector<8x16xf32>
    tpu.vector_store %arg6[%c0_11, %c0_12], %13 {strides = array<i32>} : memref<8x16xf32, #tpu.memory_space<vmem>>, vector<8x16xf32>,
    return
  }
  func.func @transform_0(%arg0: i32) -> (i32, i32) {
    %c0_i32 = arith.constant 0 : i32
    %c0_i32_0 = arith.constant 0 : i32
    return %arg0, %c0_i32 : i32, i32
  }
  func.func @transform_1(%arg0: i32) -> (i32, i32) {
    %c0_i32 = arith.constant 0 : i32
    %c0_i32_0 = arith.constant 0 : i32
    %c0_i32_1 = arith.constant 0 : i32
    return %c0_i32, %c0_i32_0 : i32, i32
  }
  func.func @transform_2(%arg0: i32) -> (i32, i32) {
    %c0_i32 = arith.constant 0 : i32
    %c0_i32_0 = arith.constant 0 : i32
    %c0_i32_1 = arith.constant 0 : i32
    return %c0_i32, %c0_i32_0 : i32, i32
  }
  func.func @transform_3(%arg0: i32) -> (i32, i32) {
    %c0_i32 = arith.constant 0 : i32
    %c0_i32_0 = arith.constant 0 : i32
    %c0_i32_1 = arith.constant 0 : i32
    return %c0_i32, %c0_i32_0 : i32, i32
  }
  func.func @transform_4(%arg0: i32) -> (i32, i32) {
    %c0_i32 = arith.constant 0 : i32
    %c0_i32_0 = arith.constant 0 : i32
    %c0_i32_1 = arith.constant 0 : i32
    return %c0_i32, %c0_i32_0 : i32, i32
  }
  func.func @transform_5(%arg0: i32) -> (i32, i32) {
    %c0_i32 = arith.constant 0 : i32
    %c0_i32_0 = arith.constant 0 : i32
    return %arg0, %c0_i32 : i32, i32
  }
}

</mosaic_0001>

<bundles_post_ra>
// kernel: linear_regression_forward.1
= control target key start
LH: loop header
LB: loop body
LE: loop exit
PB: predicated region body
PF: predicated region fallthrough
CT: control target
= control target key end

     0   :  { %v323_v1 = vmov 0.0   ;;  %vm324_vm0 = vmmov 0   ;;  %v325_v6 = vmov 0.0|0.0   ;;  %vm47_vm1 = vcmask 261120   ;;  %s432_s0 = inlined_call_operand.vmem [shape: f32[8,32], index: 0, kind: input, shape index: {}]   ;;  %s433_s1 = inlined_call_operand.vmem [shape: bf16[32,128], index: 1, kind: input, shape index: {}]   ;;  %s434_s2 = inlined_call_operand.vmem [shape: f32[1,128], index: 2, kind: input, shape index: {}]   ;;  %s435_s3 = inlined_call_operand.vmem [shape: f32[128,16], index: 3, kind: input, shape index: {}]   ;;  %s436_s4 = inlined_call_operand.vmem [shape: f32[1,16], index: 4, kind: input, shape index: {}]   ;;  %s437_s5 = inlined_call_operand.hbm [shape: f32[8,16], index: 5, kind: output, shape index: {}]  }
   0x1   :  { %v297_v0 = vld [vmem:[%s433_s1] sm:$0xff]   ;;  %226 = vmatprep.subr.bf16.mxu0 %v323_v1  ;;  %v298_v2 = vld [vmem:[%s433_s1 + $0x8] sm:$0xff]   ;;  %230 = vmatprep.mubr.msk.bf16.mxu0 %vm324_vm0, %v323_v1  ;;  %v94_v8 = vld [vmem:[%s435_s3 + $0x10] sm:$0xff] }
   0x2   :  { %227 = vmatpush3.bf16.msra.mxu0 %v297_v0  ;;  %v22_v3 = vld [vmem:[%s432_s0] sm:$0xff]  ;;  %v93_v5 = vld [vmem:[%s435_s3 + $0x8] sm:$0xff]  ;;  %269 = vmatprep.subr.bf16.mxu1 %v325_v6  ;;  %v95_v9 = vld [vmem:[%s435_s3 + $0x18] sm:$0xff] }
   0x3   :  { %v92_v4 = vld [vmem:[%s435_s3] sm:$0xff]  ;;  %228 = vmatprep.subr.bf16.mxu0 %v323_v1  ;;  %266 = vmatprep.mubr.msk.f32.mxu1 %vm324_vm0, %v323_v1  ;;  %v23_v10 = vpack.c.bf16 %v22_v3, %v22_v3  ;;  %v273_v11 = vpack.c.bf16 %v95_v9, %v94_v8  ;;  %v97_v13 = vld [vmem:[%s435_s3 + $0x28] sm:$0xff] }
   0x4   :  { %v270_v7 = vpack.c.bf16 %v93_v5, %v92_v4  ;;  %v96_v12 = vld [vmem:[%s435_s3 + $0x20] sm:$0xff] }
   0x6   :  { %271 = vmatpush3.bf16.msra.mxu1 %v270_v7  ;;  %229 = vmatpush3.bf16.msra.mxu0 %v298_v2 }
   0x7   :  { %272 = vmatprep.subr.bf16.mxu1 %v325_v6 }
   0x8   :  { %10 = vsyncpa [#allocation3], 0  ;;  %v276_v14 = vpack.c.bf16 %v97_v13, %v96_v12  ;;  %v98_v15 = vld [vmem:[%s435_s3 + $0x30] sm:$0xff]  ;;  %v99_v16 = vld [vmem:[%s435_s3 + $0x38] sm:$0xff]  ;;  %s326_s6 = smov [#allocation2]   ;;  %vm185_vm2 = vcmask 130048  }
   0x9   :  { %231 = vmatmul.mubr.msk.bf16.vlgmr.msra.gmra.mrb[0].mxu0 %vm47_vm1, %v23_v10  ;;  %v279_v17 = vpack.c.bf16 %v99_v16, %v98_v15  ;;  %v100_v18 = vld [vmem:[%s435_s3 + $0x40] sm:$0xff]  ;;  %v101_v19 = vld [vmem:[%s435_s3 + $0x48] sm:$0xff]  ;;  %v102_v21 = vld [vmem:[%s435_s3 + $0x50] sm:$0xff]  ;;  %s193_s7 = sshll.u32 %s326_s6, 4  ;;  %s194_s7 = int_to_ptr.vmem [resolvable:$true] %s193_s7 }
   0xa   :  { %274 = vmatpush3.bf16.msra.mxu1 %v273_v11  ;;  %v282_v20 = vpack.c.bf16 %v101_v19, %v100_v18  ;;  %v103_v22 = vld [vmem:[%s435_s3 + $0x58] sm:$0xff]  ;;  %v104_v24 = vld [vmem:[%s435_s3 + $0x60] sm:$0xff]  ;;  %v105_v25 = vld [vmem:[%s435_s3 + $0x68] sm:$0xff]  ;;  %p304_p1 = scmp.lt.s32.totalorder %s194_s7, %s194_s7 }
   0xb   :  { %275 = vmatprep.subr.bf16.mxu1 %v325_v6  ;;  %v285_v23 = vpack.c.bf16 %v103_v22, %v102_v21  ;;  %v288_v26 = vpack.c.bf16 %v105_v25, %v104_v24  ;;  %v106_v27 = vld [vmem:[%s435_s3 + $0x70] sm:$0xff]  ;;  %v107_v28 = vld [vmem:[%s435_s3 + $0x78] sm:$0xff]  ;;  %v201_v30 = vld [vmem:[%s434_s2] ss:$0 sm:$0xff]  ;;  %s299_s2 = scalar_lea.vmem %s194_s7, 128 }
   0xc   :  { %v291_v29 = vpack.c.bf16 %v107_v28, %v106_v27  ;;  %v205_v37 = vld [vmem:[%s436_s4] ss:$0 sm:$0xff]  ;;  %p300_p0 = scmp.ne.s32.totalorder %s194_s7, %s299_s2  ;;  %p305_p2 = scmp.lt.s32.totalorder %s299_s2, %s299_s2 }
   0xe   :  { %277 = vmatpush3.bf16.msra.mxu1 %v276_v14  ;;  %p306_p3 = por %p305_p2, %p304_p1 }
   0xf   :  { %278 = vmatprep.subr.bf16.mxu1 %v325_v6 }
  0x10   :  { %p307_p4 = pnand %p306_p3, %p300_p0 }
  0x12   :  { %280 = vmatpush3.bf16.msra.mxu1 %v279_v17 }
  0x13   :  { %281 = vmatprep.subr.bf16.mxu1 %v325_v6 }
  0x16   :  { %283 = vmatpush3.bf16.msra.mxu1 %v282_v20 }
  0x17   :  { %284 = vmatprep.subr.bf16.mxu1 %v325_v6 }
  0x1a   :  { %286 = vmatpush3.bf16.msra.mxu1 %v285_v23 }
  0x1b   :  { %287 = vmatprep.subr.bf16.mxu1 %v325_v6 }
  0x1e   :  { %289 = vmatpush3.bf16.msra.mxu1 %v288_v26 }
  0x1f   :  { %290 = vmatprep.subr.bf16.mxu1 %v325_v6 }
  0x22   :  { %292 = vmatpush3.bf16.msra.mxu1 %v291_v29 }
  0xdc   :  { %v85_v31 = vpop.f32.mrb[0].mxu0 }
  0xdd   :  { %v86_v32 = vadd.f32 %v201_v30, %v85_v31  ;;  %v232_v33 = vpop.f32.mrb[1].mxu0 }
  0xde   :  { %v88_v34 = vpop.f32.mrb[2].mxu0 }
  0xdf   :  { %v91_v35 = vmax.f32 %v86_v32, 0.0  ;;  %v233_v36 = vpop.f32.mrb[3].mxu0 }
  0xe1   :  { %267 = vmatmul.mubr.f32.vlgmr.msra.gmra.mrb[0].mxu1 %v91_v35 }
 0x1b4   :  { %v181_v38 = vpop.f32.mrb[0].mxu1 }
 0x1b5   :  { %v182_v39 = vadd.f32 %v205_v37, %v181_v38  ;;  %v268_v40 = vpop.f32.mrb[1].mxu1 }
 0x1b7   :  { %186 = vst.msk [vmem:[#allocation2] sm:$0xff] %vm185_vm2, %v182_v39 }
 0x1b8   :  { %310 = shalt.err (!%p307_p4)
}
 0x1b9   :  { %s311_s9 = scalar_lea.hbm %s437_s5, 128 }
 0x1ba   :  { %p312_p5 = scmp.ne.s32.totalorder %s437_s5, %s311_s9  ;;  %p315_p6 = scmp.lt.u32.totalorder %s311_s9, %s437_s5 }
 0x1bc   :  { %p317_p7 = pnand %p315_p6, %p312_p5 }
 0x1be   :  { %320 = shalt.err (!%p317_p7)
}
 0x1bf   :  { %196 = dma.vmem_to_hbm [thread:$0]  %s194_s7, 128, %s437_s5, [#allocation3]  }
 0x1c0   :  { %321 = dma.done.wait [#allocation3], 128  }
 0x1c1   :  { %322 = vsyncadd [#allocation3], 4294967168 }
 0x1c2   :  { %200 = vsyncpa [#allocation3], 1 }

</bundles_post_ra>
